<compile_context>
chip_gen: v7x
topology: tpu7x:2x2x1
jax: 0.10.0
libtpu: 0.0.40
codegen_flags: <defaults>
</compile_context>

<pallas_src>
import functools
import math

import jax
import jax.numpy as jnp
from jax.experimental import pallas as pl
from jax.experimental.pallas import tpu as pltpu


# --------------------------------- helpers ----------------------------------

def _sigmoid(x):
    return 1.0 / (1.0 + jnp.exp(-x))


def _softplus(x):
    # numerically-safe softplus (matches torch softplus)
    return jnp.where(x > 20.0, x, jnp.log(1.0 + jnp.exp(jnp.minimum(x, 20.0))))


# ---------------- W_P patch embedding: simple tiled linear -------------------

def _linear_bias_kernel(x_ref, w_ref, b_ref, o_ref):
    o_ref[...] = (jnp.dot(x_ref[...], w_ref[...], preferred_element_type=jnp.float32)
                  + b_ref[...]).astype(o_ref.dtype)


def linear(x, w, b):
    """x: (M, K) @ w: (K, N) + b: (N,) -> (M, N) float32."""
    M, K = x.shape
    N = w.shape[1]
    tm = M if M <= 512 else 256          # cdiv grid handles non-divisible M
    return pl.pallas_call(
        _linear_bias_kernel,
        out_shape=jax.ShapeDtypeStruct((M, N), jnp.float32),
        grid=(pl.cdiv(M, tm),),
        in_specs=[
            pl.BlockSpec((tm, K), lambda i: (i, 0)),
            pl.BlockSpec((K, N), lambda i: (0, 0)),
            pl.BlockSpec((1, N), lambda i: (0, 0)),
        ],
        out_specs=pl.BlockSpec((tm, N), lambda i: (i, 0)),
        compiler_params=pltpu.CompilerParams(dimension_semantics=("parallel",)),
    )(x, w, b.reshape(1, N))


# ------------- fused [Mamba block + FFN] layer, one pallas_call --------------
# Rows inside the kernel are flattened g-major: row r = g*L + t for the G
# sequences folded into this grid step.

def _layer_kernel(x_ref, win_ref, cw_ref, cb_ref, wxp_ref, dtw_ref, dtb_ref,
                  At_ref, D_ref, wf_ref, b1_ref, w2_ref, b2_ref, o_ref,
                  xpad, dts_s, dtus_s, bms_s, cms_s, dA_s, dBu_s, ys_s,
                  *, L, G, act):
    GL, Dm = x_ref.shape                 # GL == G * L
    S, Ci = At_ref.shape
    K = cw_ref.shape[0]
    R = dtw_ref.shape[0]
    SG = S * G
    unroll_n = L if L <= 8 else 8

    x = x_ref[...]                                                    # (GL, Dm)

    # ---- fused in_proj: one matmul, split x/z with static lane slices ----
    xz = jnp.dot(x, win_ref[...], preferred_element_type=jnp.float32)  # (GL, 2Ci)
    xin = xz[:, :Ci]
    z = xz[:, Ci:]

    # ---- causal depthwise conv (K taps) + SiLU; zero left-pad kept in VMEM ----
    if K > 1:
        xpad[pl.ds(0, K - 1), :] = jnp.zeros((K - 1, Ci), jnp.float32)
    xpad[pl.ds(K - 1, GL), :] = xin
    row = jax.lax.broadcasted_iota(jnp.int32, (GL, Ci), 0)
    cw = cw_ref[...]                                                  # (K, Ci)
    acc = jnp.zeros((GL, Ci), jnp.float32) + cb_ref[...]
    for k in range(K):                                                # static unroll
        j = K - 1 - k                    # how many steps back in time this tap reaches
        tap = xpad[pl.ds(k, GL), :]
        if j > 0:
            # zero rows whose within-sequence timestep t < j (per-sequence causal edge)
            bad = row < j                                             # sequence g == 0
            for g in range(1, G):
                bad = jnp.logical_or(
                    bad, jnp.logical_and(row >= g * L, row < g * L + j))
            tap = jnp.where(bad, 0.0, tap)
        acc = acc + tap * cw[k:k + 1, :]
    xconv = acc * _sigmoid(acc)                                       # SiLU, (GL, Ci)

    # ---- fused x_proj: one matmul, split dt/B/C in VMEM ----
    xproj = jnp.dot(xconv, wxp_ref[...], preferred_element_type=jnp.float32)  # (GL, R+2S)
    dt_low = xproj[:, :R]
    bms_s[...] = xproj[:, R:R + S]
    cms_s[...] = xproj[:, R + S:]

    # ---- dt_proj + softplus (hoisted, vectorized over all rows) ----
    dt = _softplus(jnp.dot(dt_low, dtw_ref[...],
                           preferred_element_type=jnp.float32) + dtb_ref[...])  # (GL, Ci)
    dts_s[...] = dt
    dtus_s[...] = dt * xconv

    At = At_ref[...]                                                  # (S, Ci), A = -exp(A_log)

    # ---- prep loop: precompute dA / dBu per (t, g); NO carried dependence,
    #      so exp (EUP) and the outer product (MXU) are off the scan chain ----
    def prep(t, c):
        for g in range(G):                                            # static unroll
            r = g * L + t
            base = t * SG + g * S
            if S % 8 == 0:
                base = pl.multiple_of(base, 8)
            dt_r = dts_s[pl.ds(r, 1), :]                              # (1, Ci)
            dtu_r = dtus_s[pl.ds(r, 1), :]                            # (1, Ci)
            b_r = bms_s[pl.ds(r, 1), :]                               # (1, S)
            dA_s[pl.ds(base, S), :] = jnp.exp(dt_r * At)              # (S, Ci)
            dBu_s[pl.ds(base, S), :] = jax.lax.dot_general(           # outer product
                b_r, dtu_r, (((0,), (0,)), ((), ())),
                preferred_element_type=jnp.float32)                   # (S, Ci)
        return c

    jax.lax.fori_loop(0, L, prep, 0, unroll=unroll_n)

    # ---- recurrence loop: critical path is a single fma per step ----
    def step(t, h):
        base = t * SG
        if SG % 8 == 0:
            base = pl.multiple_of(base, 8)
        h = dA_s[pl.ds(base, SG), :] * h + dBu_s[pl.ds(base, SG), :]  # (SG, Ci)
        for g in range(G):                                            # off-chain y
            r = g * L + t
            c_r = cms_s[pl.ds(r, 1), :]                               # (1, S)
            y_r = jnp.dot(c_r, h[g * S:(g + 1) * S, :],
                          preferred_element_type=jnp.float32)         # (1, Ci)
            ys_s[pl.ds(r, 1), :] = y_r
        return h

    jax.lax.fori_loop(0, L, step, jnp.zeros((SG, Ci), jnp.float32), unroll=unroll_n)

    # ---- D skip + SiLU(z) gate + fused (out_proj . lin1) + act + lin2 ----
    gate = z * _sigmoid(z)
    yrow = (ys_s[...] + D_ref[...] * xconv) * gate                    # (GL, Ci)
    h1 = jnp.dot(yrow, wf_ref[...], preferred_element_type=jnp.float32) + b1_ref[...]
    if act == "relu":
        h1 = jnp.maximum(h1, 0.0)
    else:
        h1 = jax.nn.gelu(h1, approximate=True)
    o_ref[...] = (jnp.dot(h1, w2_ref[...], preferred_element_type=jnp.float32)
                  + b2_ref[...]).astype(o_ref.dtype)


def mamba_ffn_layer(xg, p, act, G, L):
    """One fused encoder layer.  xg: (Bgroups, G*L, d_model) -> same shape."""
    Bg, GL, Dm = xg.shape
    m = p["mamba"]
    Ci, S = m["A_log"].shape
    K = m["conv_w"].shape[0]
    R = m["dt_proj_w"].shape[0]
    Dff = p["lin1_w"].shape[1]

    At = -jnp.exp(m["A_log"]).T                         # (S, Ci)
    w_fused = m["out_proj_w"] @ p["lin1_w"]             # (Ci, Dff): no bias/act between

    kernel = functools.partial(_layer_kernel, L=L, G=G, act=act)
    return pl.pallas_call(
        kernel,
        out_shape=jax.ShapeDtypeStruct((Bg, GL, Dm), jnp.float32),
        grid=(Bg,),
        in_specs=[
            pl.BlockSpec((None, GL, Dm), lambda b: (b, 0, 0)),
            pl.BlockSpec((Dm, 2 * Ci), lambda b: (0, 0)),
            pl.BlockSpec((K, Ci), lambda b: (0, 0)),
            pl.BlockSpec((1, Ci), lambda b: (0, 0)),
            pl.BlockSpec((Ci, R + 2 * S), lambda b: (0, 0)),
            pl.BlockSpec((R, Ci), lambda b: (0, 0)),
            pl.BlockSpec((1, Ci), lambda b: (0, 0)),
            pl.BlockSpec((S, Ci), lambda b: (0, 0)),
            pl.BlockSpec((1, Ci), lambda b: (0, 0)),
            pl.BlockSpec((Ci, Dff), lambda b: (0, 0)),
            pl.BlockSpec((1, Dff), lambda b: (0, 0)),
            pl.BlockSpec((Dff, Dm), lambda b: (0, 0)),
            pl.BlockSpec((1, Dm), lambda b: (0, 0)),
        ],
        out_specs=pl.BlockSpec((None, GL, Dm), lambda b: (b, 0, 0)),
        scratch_shapes=[
            pltpu.VMEM((K - 1 + GL, Ci), jnp.float32),   # zero-padded conv input
            pltpu.VMEM((GL, Ci), jnp.float32),           # softplus(dt)
            pltpu.VMEM((GL, Ci), jnp.float32),           # dt * u
            pltpu.VMEM((GL, S), jnp.float32),            # B
            pltpu.VMEM((GL, S), jnp.float32),            # C
            pltpu.VMEM((L * G * S, Ci), jnp.float32),    # hoisted dA = exp(dt*A)
            pltpu.VMEM((L * G * S, Ci), jnp.float32),    # hoisted dBu = B (x) dt*u
            pltpu.VMEM((GL, Ci), jnp.float32),           # y accumulator
        ],
        compiler_params=pltpu.CompilerParams(dimension_semantics=("parallel",)),
    )(xg, m["in_proj_w"], m["conv_w"], m["conv_b"].reshape(1, Ci),
      m["x_proj_w"], m["dt_proj_w"], m["dt_proj_b"].reshape(1, Ci),
      At, m["D"].reshape(1, Ci),
      w_fused, p["lin1_b"].reshape(1, Dff), p["lin2_w"], p["lin2_b"].reshape(1, Dm))


# ----------------------------- model (JAX glue) ------------------------------

def long_encoder_forward(z, params, cfg):
    # z: (bs, nvars, long_context_window)
    bs, nvars, _ = z.shape
    patch_len, stride = cfg["m_patch_len"], cfg["m_stride"]
    if cfg["padding_patch"] == "end":
        z = jnp.concatenate([z, jnp.repeat(z[..., -1:], stride, axis=-1)], axis=-1)
    L = (z.shape[-1] - patch_len) // stride + 1
    starts = jnp.arange(L) * stride
    idx = starts[:, None] + jnp.arange(patch_len)[None, :]
    patches = z[:, :, idx]                          # (bs, nvars, L, patch_len)
    x = patches.reshape(bs * nvars * L, patch_len)

    x = linear(x, params["W_P_w"], params["W_P_b"])           # patch embedding
    d_model = x.shape[-1]
    B0 = bs * nvars
    x = x.reshape(B0, L, d_model)

    if params["layers"]:
        d_inner = params["layers"][0]["mamba"]["A_log"].shape[0]
        # Fold G sequences per kernel instance so each serial scan step advances
        # G sequences; keeps the grid >= 2 when possible (v7x: 2 TCs).
        G = max(1, min(8, max(1, 128 // d_inner), B0))
        Bp = ((B0 + G - 1) // G) * G
        if Bp != B0:
            x = jnp.concatenate(
                [x, jnp.zeros((Bp - B0, L, d_model), x.dtype)], axis=0)
        xg = x.reshape(Bp // G, G * L, d_model)      # contiguous, g-major rows
        for lp in params["layers"]:
            xg = mamba_ffn_layer(xg, lp, cfg["act"], G, L)
        x = xg.reshape(Bp, L, d_model)[:B0]

    x = x.reshape(bs, nvars, L, d_model)
    return jnp.transpose(x, (0, 1, 3, 2))            # (bs, nvars, d_model, m_patch_num)


# ----------------------------- deterministic init ----------------------------

def init_params(key, cfg):
    d_model, d_ff = cfg["d_model"], cfg["d_ff"]
    d_state, d_conv = cfg["d_state"], cfg["d_conv"]
    m_patch_len = cfg["m_patch_len"]
    d_inner = 2 * d_model
    dt_rank = math.ceil(d_model / 16)

    def dense(k, fan_in, fan_out):
        return jax.random.normal(k, (fan_in, fan_out), jnp.float32) / jnp.sqrt(float(fan_in))

    keys = iter(jax.random.split(key, 128))
    params = {
        "W_P_w": dense(next(keys), m_patch_len, d_model),
        "W_P_b": jnp.zeros((d_model,), jnp.float32),
        "layers": [],
    }
    for _ in range(cfg["m_layers"]):
        mamba = {
            "in_proj_w": dense(next(keys), d_model, 2 * d_inner),
            "conv_w": jax.random.normal(next(keys), (d_conv, d_inner), jnp.float32) * 0.2,
            "conv_b": jnp.zeros((d_inner,), jnp.float32),
            "x_proj_w": dense(next(keys), d_inner, dt_rank + 2 * d_state),
            "dt_proj_w": dense(next(keys), dt_rank, d_inner),
            "dt_proj_b": jax.random.uniform(next(keys), (d_inner,), jnp.float32,
                                            minval=-4.0, maxval=-2.0),
            "A_log": jnp.log(jnp.broadcast_to(
                jnp.arange(1, d_state + 1, dtype=jnp.float32)[None, :],
                (d_inner, d_state))),
            "D": jnp.ones((d_inner,), jnp.float32),
            "out_proj_w": dense(next(keys), d_inner, d_model),
        }
        params["layers"].append({
            "mamba": mamba,
            "lin1_w": dense(next(keys), d_model, d_ff),
            "lin1_b": jnp.zeros((d_ff,), jnp.float32),
            "lin2_w": dense(next(keys), d_ff, d_model),
            "lin2_b": jnp.zeros((d_model,), jnp.float32),
        })
    return params


# ------------------------------------ main -----------------------------------

if __name__ == "__main__":
    cfg = dict(
        c_in=3, long_context_window=32, m_patch_len=8, m_stride=8,
        m_layers=2, d_model=32, d_ff=64, d_state=8, d_conv=4,
        act="gelu", padding_patch=None,
    )
    key = jax.random.PRNGKey(0)
    kp, kx = jax.random.split(key)
    params = init_params(kp, cfg)

    bs = 2
    z = jax.random.normal(kx, (bs, cfg["c_in"], cfg["long_context_window"]), jnp.float32)

    out = long_encoder_forward(z, params, cfg)
    out = jax.block_until_ready(out)

    m_patch_num = (cfg["long_context_window"] - cfg["m_patch_len"]) // cfg["m_stride"] + 1
    assert out.shape == (bs, cfg["c_in"], cfg["d_model"], m_patch_num), out.shape
    assert bool(jnp.all(jnp.isfinite(out)))
    print("KERNEL_OK")
</pallas_src>

<mosaic_0001>
module attributes {stable_mosaic.version = 11 : i64} {
  func.func @_linear_bias_kernel(%arg0: i32, %arg1: memref<24x8xf32, #tpu.memory_space<vmem>>, %arg2: memref<8x32xf32, #tpu.memory_space<vmem>>, %arg3: memref<1x32xf32, #tpu.memory_space<vmem>>, %arg4: memref<24x32xf32, #tpu.memory_space<vmem>>) attributes {dimension_semantics = [#tpu.dimension_semantics<parallel>], iteration_bounds = array<i64: 1>, scalar_prefetch = 0 : i64, scratch_operands = 0 : i64, tpu.core_type = #tpu.core_type<tc>, window_params = [{transform_indices = @transform_0, window_bounds = array<i64: 24, 8>}, {pipeline_mode = #tpu.pipeline_mode<synchronous>, transform_indices = @transform_1, window_bounds = array<i64: 8, 32>}, {pipeline_mode = #tpu.pipeline_mode<synchronous>, transform_indices = @transform_2, window_bounds = array<i64: 1, 32>}, {transform_indices = @transform_3, window_bounds = array<i64: 24, 32>}]} {
    %c0 = arith.constant 0 : index
    %c0_0 = arith.constant 0 : index
    %0 = vector.load %arg1[%c0, %c0_0] : memref<24x8xf32, #tpu.memory_space<vmem>>, vector<24x8xf32>
    %c0_1 = arith.constant 0 : index
    %c0_2 = arith.constant 0 : index
    %1 = vector.load %arg2[%c0_1, %c0_2] : memref<8x32xf32, #tpu.memory_space<vmem>>, vector<8x32xf32>
    %cst = arith.constant dense<0.000000e+00> : vector<24x32xf32>
    %2 = tpu.matmul %0, %1, %cst {dimension_numbers = #tpu.dot_dimension_numbers<[1], [0], [0], [1], [0, 0, 1, 1], [], []>} : vector<24x8xf32>, vector<8x32xf32>, vector<24x32xf32> -> vector<24x32xf32>
    %c0_3 = arith.constant 0 : index
    %c0_4 = arith.constant 0 : index
    %3 = vector.load %arg3[%c0_3, %c0_4] : memref<1x32xf32, #tpu.memory_space<vmem>>, vector<1x32xf32>
    %4 = vector.broadcast %3 : vector<1x32xf32> to vector<24x32xf32>
    %5 = arith.addf %2, %4 : vector<24x32xf32>
    %c0_5 = arith.constant 0 : index
    %c0_6 = arith.constant 0 : index
    %6 = vector.load %arg4[%c0_5, %c0_6] : memref<24x32xf32, #tpu.memory_space<vmem>>, vector<24x32xf32>
    tpu.vector_store %arg4[%c0_5, %c0_6], %5 {strides = array<i32>} : memref<24x32xf32, #tpu.memory_space<vmem>>, vector<24x32xf32>,
    return
  }
  func.func @transform_0(%arg0: i32) -> (i32, i32) {
    %c0_i32 = arith.constant 0 : i32
    %c0_i32_0 = arith.constant 0 : i32
    return %arg0, %c0_i32 : i32, i32
  }
  func.func @transform_1(%arg0: i32) -> (i32, i32) {
    %c0_i32 = arith.constant 0 : i32
    %c0_i32_0 = arith.constant 0 : i32
    %c0_i32_1 = arith.constant 0 : i32
    return %c0_i32, %c0_i32_0 : i32, i32
  }
  func.func @transform_2(%arg0: i32) -> (i32, i32) {
    %c0_i32 = arith.constant 0 : i32
    %c0_i32_0 = arith.constant 0 : i32
    %c0_i32_1 = arith.constant 0 : i32
    return %c0_i32, %c0_i32_0 : i32, i32
  }
  func.func @transform_3(%arg0: i32) -> (i32, i32) {
    %c0_i32 = arith.constant 0 : i32
    %c0_i32_0 = arith.constant 0 : i32
    return %arg0, %c0_i32 : i32, i32
  }
}

</mosaic_0001>

<bundles_post_ra>
// kernel: tpu_custom_call.1
= control target key start
LH: loop header
LB: loop body
LE: loop exit
PB: predicated region body
PF: predicated region fallthrough
CT: control target
= control target key end

     0   :  { %vm26_vm0 = vcmask 64512   ;;  %v186_v2 = vmov 0.0   ;;  %vm187_vm1 = vmmov 0   ;;  %s238_s0 = inlined_call_operand.vmem [shape: f32[24,8], index: 0, kind: input, shape index: {}]   ;;  %s239_s1 = inlined_call_operand.vmem [shape: f32[8,32], index: 1, kind: input, shape index: {}]   ;;  %s240_s2 = inlined_call_operand.vmem [shape: f32[1,32], index: 2, kind: input, shape index: {}]   ;;  %s241_s3 = inlined_call_operand.hbm [shape: f32[24,32], index: 3, kind: output, shape index: {}]  }
   0x1   :  { %v18_v0 = vld [vmem:[%s239_s1] sm:$0xff]  ;;  %v16_v1 = vld [vmem:[%s238_s0 + $0x8] sm:$0xff]  ;;  %155 = vmatprep.subr.mxu1 %v186_v2  ;;  %149 = vmatprep.mubr.msk.f32.mxu1 %vm187_vm1, %v186_v2 }
   0x2   :  { %8 = vsyncpa [#allocation3], 0  ;;  %156 = vmatpush3.msra.mxu1 %v18_v0  ;;  %144 = vmatprep.subr.mxu0 %v186_v2  ;;  %v15_v3 = vld [vmem:[%s238_s0] sm:$0xff]  ;;  %v17_v4 = vld [vmem:[%s238_s0 + $0x10] sm:$0xff]  ;;  %vm116_vm2 = vcmask 261120   ;;  %s188_s21 = smov [#allocation2]  }
   0x3   :  { %150 = vmatmul.mubr.msk.f32.vlgmr.msra.gmra.mrb[0].mxu1 %vm26_vm0, %v16_v1  ;;  %145 = vmatpush3.msra.mxu0 %v18_v0  ;;  %v136_v5 = vld [vmem:[%s240_s2] ss:$0 sm:$0xff]  ;;  %s125_s22 = sshll.u32 %s188_s21, 4  ;;  %s126_s22 = int_to_ptr.vmem [resolvable:$true] %s125_s22 }
   0x4   :  { %146 = vmatprep.mubr.msk.f32.mxu0 %vm187_vm1, %v186_v2  ;;  %152 = vmatprep.mubr.msk.f32.mxu1 %vm187_vm1, %v186_v2  ;;  %s162_s0 = scalar_lea.vmem %s126_s22, 384  ;;  %p167_p1 = scmp.lt.s32.totalorder %s126_s22, %s126_s22 }
   0x5   :  { %147 = vmatmul.mubr.msk.f32.vlgmr.msra.gmra.mrb[0].mxu0 %vm26_vm0, %v15_v3  ;;  %p163_p0 = scmp.ne.s32.totalorder %s126_s22, %s162_s0  ;;  %p168_p2 = scmp.lt.s32.totalorder %s162_s0, %s162_s0 }
   0x7   :  { %153 = vmatmul.mubr.msk.f32.gmra.mrb[2].mxu1 %vm26_vm0, %v17_v4  ;;  %p169_p3 = por %p168_p2, %p167_p1 }
   0x9   :  { %p170_p4 = pnand %p169_p3, %p163_p0 }
  0xd6   :  { %v107_v6 = vpop.f32.mrb[0].mxu1 }
  0xd7   :  { %v108_v7 = vadd.f32 %v136_v5, %v107_v6  ;;  %v151_v8 = vpop.f32.mrb[1].mxu1 }
  0xd8   :  { %v102_v9 = vpop.f32.mrb[0].mxu0 }
  0xd9   :  { %118 = vst.msk [vmem:[#allocation2 + $0x8] sm:$0xff] %vm116_vm2, %v108_v7  ;;  %v103_v10 = vadd.f32 %v136_v5, %v102_v9  ;;  %v148_v11 = vpop.f32.mrb[1].mxu0 }
  0xda   :  { %v112_v12 = vpop.f32.mrb[2].mxu1 }
  0xdb   :  { %117 = vst.msk [vmem:[#allocation2] sm:$0xff] %vm116_vm2, %v103_v10  ;;  %v113_v13 = vadd.f32 %v136_v5, %v112_v12  ;;  %v154_v14 = vpop.f32.mrb[3].mxu1 }
  0xdd   :  { %119 = vst.msk [vmem:[#allocation2 + $0x10] sm:$0xff] %vm116_vm2, %v113_v13 }
  0xde   :  { %173 = shalt.err (!%p170_p4)
}
  0xdf   :  { %s174_s24 = scalar_lea.hbm %s241_s3, 384 }
  0xe0   :  { %p175_p5 = scmp.ne.s32.totalorder %s241_s3, %s174_s24  ;;  %p178_p6 = scmp.lt.u32.totalorder %s174_s24, %s241_s3 }
  0xe2   :  { %p180_p7 = pnand %p178_p6, %p175_p5 }
  0xe4   :  { %183 = shalt.err (!%p180_p7)
}
  0xe5   :  { %s189_s29 = smov 128   ;;  %s190_s30 = smov 8  }
  0xe6   :  { %131 = dma.vmem_to_hbm [thread:$0]  %s126_s22, 384, %s241_s3, [#allocation3], %s189_s29, %s189_s29, %s190_s30  }
  0xe7   :  { %184 = dma.done.wait [#allocation3], 384  }
  0xe8   :  { %185 = vsyncadd [#allocation3], 4294966912 }
  0xe9   :  { %135 = vsyncpa [#allocation3], 1 }

</bundles_post_ra>
